<compile_context>
chip_gen: v7x
topology: tpu7x:2x2x1
jax: 0.10.0
libtpu: 0.0.40
codegen_flags: <defaults>
</compile_context>

<pallas_src>
import math

import jax
import jax.numpy as jnp
import numpy as np
from jax.experimental import pallas as pl
from jax.experimental.pallas import tpu as pltpu


# -----------------------------------------------------------------------------
# Generation-aware VMEM budgeting.
# -----------------------------------------------------------------------------
def _vmem_capacity_bytes():
    try:
        info = pltpu.get_tpu_info()
        for attr in ("vmem_capacity_bytes", "vmem_size_bytes", "vmem_bytes"):
            cap = getattr(info, attr, None)
            if cap:
                return int(cap)
    except Exception:
        pass
    return 64 << 20  # conservative fallback = v7x per-core physical VMEM


def _vmem_budget_bytes():
    # ~half of physical VMEM for the streamed P tile (double-buffered):
    #   v5e/v6e (128 MiB physical) -> 64 MiB budget -> big contiguous row tiles
    #   v7x     ( 64 MiB physical) -> 32 MiB budget
    return _vmem_capacity_bytes() // 2


# -----------------------------------------------------------------------------
# Small-N fast path: one block, no grid loop, no accumulator.
# -----------------------------------------------------------------------------
def _single_kernel(diff_ref, prec_ref, out_ref):
    diff = diff_ref[...]                                        # (1, N) f32
    lhs = diff.astype(prec_ref.dtype) if prec_ref.dtype != diff.dtype else diff
    pd = jnp.dot(lhs, prec_ref[...],
                 preferred_element_type=jnp.float32)            # (1, N) f32
    out_ref[0, 0] = 0.5 * jnp.sum(pd * diff)


def _loss_residual_single(diff2, prec):
    n = diff2.shape[1]
    isz = jnp.dtype(prec.dtype).itemsize
    cap = _vmem_capacity_bytes()
    vmem_limit = int(min(cap, max(2 * n * n * isz + 16 * n + (1 << 20), 16 << 20)))
    out = pl.pallas_call(
        _single_kernel,
        out_shape=jax.ShapeDtypeStruct((1, 1), jnp.float32),
        grid_spec=pltpu.PrefetchScalarGridSpec(
            num_scalar_prefetch=0,
            grid=(1,),
            in_specs=[
                pl.BlockSpec((1, n), lambda i: (0, 0)),   # diff row
                pl.BlockSpec((n, n), lambda i: (0, 0)),   # full precision matrix
            ],
            out_specs=pl.BlockSpec(memory_space=pltpu.SMEM),
        ),
        compiler_params=pltpu.CompilerParams(
            dimension_semantics=("arbitrary",),
            vmem_limit_bytes=vmem_limit,
        ),
        cost_estimate=pl.CostEstimate(
            flops=2 * n * n + 2 * n,
            transcendentals=0,
            bytes_accessed=n * n * isz + 4 * n + 4,
        ),
    )(diff2, prec)
    return out[0, 0]


# -----------------------------------------------------------------------------
# Large-N path: stream P by fully contiguous ROW tiles (tm, N).
# Per step: acc(1, N) += diff[row_tile] @ P[row_tile, :]   (MXU, f32 acc).
# The single cross-lane reduce / final dot with diff happens in the wrapper.
# -----------------------------------------------------------------------------
def _make_tiled_kernel(nb_full, nbj, needs_guard):
    def kernel(d_ref, p_ref, out_ref):
        c = pl.program_id(0)            # row-tile half (megacore split on v7x)
        j = pl.program_id(1)            # row tile within the half (reduction)

        @pl.when(j == 0)
        def _():
            out_ref[...] = jnp.zeros_like(out_ref)

        def accumulate():
            # (1, tm) @ (tm, N) on the MXU with f32 accumulation; the (1, N)
            # partial of diff^T P accumulates lane-dense into the revolving
            # VMEM output block (full, unmasked stores; no per-step reduce).
            out_ref[...] += jnp.dot(d_ref[0], p_ref[...],
                                    preferred_element_type=jnp.float32)

        if needs_guard:
            # Odd number of row tiles: last step of the second half is a
            # phantom step (clamped index_map) — skip its accumulation.
            pl.when(c * nbj + j < nb_full)(accumulate)
        else:
            accumulate()

    return kernel


def _pick_row_tile(n, itemsize, budget):
    # Largest contiguous (tm, N) row tile whose double buffer fits the budget.
    tm = budget // (2 * n * itemsize)
    tm = int(max(8, (tm // 8) * 8))
    tm = min(tm, (n // 8) * 8)
    if n // tm < 2:
        # Guarantee >= 2 row tiles so the 2-TensorCore split can engage (v7x);
        # harmless one extra grid step on single-TC parts.
        tm = max(8, ((n // 2) // 8) * 8)
    return tm


def _loss_residual_tiled(diff, prec, *, tm=None):
    n = diff.shape[0]
    isz = jnp.dtype(prec.dtype).itemsize
    cap = _vmem_capacity_bytes()
    budget = cap // 2
    if tm is None:
        tm = _pick_row_tile(n, isz, budget)
    assert tm % 8 == 0 and 8 <= tm <= n, "row tile must be a multiple of 8 and <= N"

    nb_full = n // tm               # full (tm, N) row tiles streamed by the kernel
    n_main = nb_full * tm
    rem = n - n_main                # ragged remainder rows handled by a tiny XLA matvec

    n_split = 2 if nb_full >= 2 else 1
    nbj = -(-nb_full // n_split)    # cdiv
    needs_guard = (n_split * nbj) != nb_full

    # Cast the LHS to the precision dtype ONCE here (not per grid step).
    diff_lhs = diff.astype(prec.dtype)
    d_tiles = diff_lhs[:n_main].reshape(nb_full, 1, tm)

    def d_index(c, j):
        g = c * nbj + j
        if needs_guard:
            g = jnp.minimum(g, nb_full - 1)
        return (g, 0, 0)

    def p_index(c, j):
        g = c * nbj + j
        if needs_guard:
            g = jnp.minimum(g, nb_full - 1)
        return (g, 0)

    vmem_needed = (2 * tm * n * isz        # double-buffered contiguous P row tile
                   + 2 * 8 * n * 4         # revolving (8, N) f32 accumulator blocks
                   + 4 * tm * isz          # tiny per-step diff blocks
                   + (2 << 20))            # headroom
    vmem_limit = int(min(cap, max(vmem_needed, 16 << 20)))

    kernel = _make_tiled_kernel(nb_full, nbj, needs_guard)

    partial = pl.pallas_call(
        kernel,
        out_shape=jax.ShapeDtypeStruct((8 * n_split, n), jnp.float32),
        grid_spec=pltpu.PrefetchScalarGridSpec(
            num_scalar_prefetch=0,
            grid=(n_split, nbj),
            in_specs=[
                pl.BlockSpec((1, 1, tm), d_index),     # pre-cast diff row tile (LHS)
                pl.BlockSpec((tm, n), p_index),        # fully contiguous P row tile
            ],
            # Revolving per-half, lane-dense accumulator block (constant over j).
            out_specs=pl.BlockSpec((8, n), lambda c, j: (c, 0)),
        ),
        compiler_params=pltpu.CompilerParams(
            # TODO(synk): verify with xprof that "parallel" actually shards the
            # leading axis across v7x's two TensorCores; if not, switch that
            # axis to pltpu.CORE_PARALLEL / pl.core_map.
            dimension_semantics=("parallel", "arbitrary"),
            vmem_limit_bytes=vmem_limit,
        ),
        cost_estimate=pl.CostEstimate(
            flops=2 * n_main * n,
            transcendentals=0,
            bytes_accessed=n_main * n * isz + n * isz + 8 * n_split * n * 4,
        ),
    )(d_tiles, prec)

    # All 8 sublane rows of each half's block are identical; take one row per
    # half and sum the two halves (tiny O(N) XLA op).
    v = partial[0::8, :].sum(axis=0)                     # (N,) = diff^T P  (full tiles)
    if rem:
        # Ragged remainder rows (< tm of them): tiny XLA matvec, same f32 acc.
        v = v + jnp.dot(diff_lhs[n_main:], prec[n_main:, :],
                        preferred_element_type=jnp.float32)
    return 0.5 * jnp.dot(v, diff)


# -----------------------------------------------------------------------------
# Public wrapper (matches LossResidual.forward semantics).
# -----------------------------------------------------------------------------
def loss_residual(predictions, target, precision, *, tm=None, single_block_max=None):
    """0.5 * (predictions - target)^T @ precision @ (predictions - target)."""
    n = predictions.shape[0]
    assert precision.shape == (n, n)

    pred = predictions.reshape(n).astype(jnp.float32)
    targ = target.reshape(n).astype(jnp.float32)
    diff = pred - targ
    # Keep a caller-provided bf16 precision matrix as-is (halves HBM traffic on
    # this bandwidth-bound kernel); everything else runs in f32.  Note: with a
    # bf16 P the residual is also fed to the MXU in bf16 (accumulation is f32).
    prec = precision if precision.dtype == jnp.bfloat16 else precision.astype(jnp.float32)

    isz = jnp.dtype(prec.dtype).itemsize
    if single_block_max is None:
        # Largest N whose whole double-buffered matrix fits the VMEM budget
        # (generation-aware: ~2.8k f32 / ~4k bf16 on v5e/v6e, ~2k f32 on v7x).
        single_block_max = int(math.sqrt(_vmem_budget_bytes() / (2 * isz)))

    if n <= single_block_max:
        # Single-block fast path: whole problem fits VMEM, zero loop overhead.
        return _loss_residual_single(diff.reshape(1, n), prec)
    return _loss_residual_tiled(diff, prec, tm=tm)


if __name__ == "__main__":
    key = jax.random.PRNGKey(0)
    k_pred, k_targ, k_prec = jax.random.split(key, 3)

    def make_problem(n, prec_dtype=jnp.float32):
        predictions = jax.random.normal(k_pred, (n,), dtype=jnp.float32)
        target = jax.random.normal(k_targ, (n,), dtype=jnp.float32)
        # Deterministic synthetic "noise.precision": SPD matrix (A A^T / N + I).
        A = jax.random.normal(k_prec, (n, n), dtype=jnp.float32)
        precision = (A @ A.T / n + jnp.eye(n, dtype=jnp.float32)).astype(prec_dtype)
        return predictions, target, precision

    def reference(predictions, target, precision):
        diff = predictions - target
        return 0.5 * jnp.dot(diff, precision.astype(jnp.float32) @ diff)

    # 1) Small-N single-block fast path (N = 256).
    p, t, P = make_problem(256)
    got = jax.block_until_ready(loss_residual(p, t, P))
    np.testing.assert_allclose(np.asarray(got), np.asarray(reference(p, t, P)),
                               rtol=2e-3, atol=1e-3)

    # 2) Tiled path forced, ragged N with odd tile count (N=500, tm=128 ->
    #    3 full row tiles + 116 remainder rows; exercises the clamped /
    #    guarded dual-core split and the remainder matvec).
    p, t, P = make_problem(500)
    got = jax.block_until_ready(loss_residual(p, t, P, tm=128, single_block_max=0))
    np.testing.assert_allclose(np.asarray(got), np.asarray(reference(p, t, P)),
                               rtol=2e-3, atol=1e-3)

    # 3) bf16 precision matrix through the tiled path (halved HBM traffic).
    p, t, P = make_problem(512, prec_dtype=jnp.bfloat16)
    got = jax.block_until_ready(loss_residual(p, t, P, tm=128, single_block_max=0))
    np.testing.assert_allclose(np.asarray(got), np.asarray(reference(p, t, P)),
                               rtol=5e-2, atol=1e-2)

    print("KERNEL_OK")
</pallas_src>

<mosaic_0001>
module attributes {stable_mosaic.version = 11 : i64} {
  func.func @_single_kernel(%arg0: i32, %arg1: memref<1x256xf32, #tpu.memory_space<vmem>>, %arg2: memref<256x256xf32, #tpu.memory_space<vmem>>, %arg3: memref<1x1xf32, #tpu.memory_space<smem>>) attributes {dimension_semantics = [#tpu.dimension_semantics<arbitrary>], iteration_bounds = array<i64: 1>, scalar_prefetch = 0 : i64, scratch_operands = 0 : i64, tpu.core_type = #tpu.core_type<tc>, window_params = [{pipeline_mode = #tpu.pipeline_mode<synchronous>, transform_indices = @transform_0, window_bounds = array<i64: 1, 256>}, {pipeline_mode = #tpu.pipeline_mode<synchronous>, transform_indices = @transform_1, window_bounds = array<i64: 256, 256>}, {transform_indices = @transform_2, window_bounds = array<i64: 1, 1>}]} {
    %c0 = arith.constant 0 : index
    %c0_0 = arith.constant 0 : index
    %0 = vector.load %arg1[%c0, %c0_0] : memref<1x256xf32, #tpu.memory_space<vmem>>, vector<1x256xf32>
    %c0_1 = arith.constant 0 : index
    %c0_2 = arith.constant 0 : index
    %1 = vector.load %arg2[%c0_1, %c0_2] : memref<256x256xf32, #tpu.memory_space<vmem>>, vector<256x256xf32>
    %cst = arith.constant dense<0.000000e+00> : vector<1x256xf32>
    %2 = tpu.matmul %0, %1, %cst {dimension_numbers = #tpu.dot_dimension_numbers<[1], [0], [0], [1], [0, 0, 1, 1], [], []>} : vector<1x256xf32>, vector<256x256xf32>, vector<1x256xf32> -> vector<1x256xf32>
    %3 = arith.mulf %2, %0 : vector<1x256xf32>
    %4 = vector.shape_cast %3 : vector<1x256xf32> to vector<1x1x256xf32>
    %cst_3 = arith.constant dense<0.000000e+00> : vector<1xf32>
    %5 = vector.multi_reduction <add>, %4, %cst_3 [1, 2] : vector<1x1x256xf32> to vector<1xf32>
    %6 = vector.shape_cast %5 : vector<1xf32> to vector<1x1x1xf32>
    %7 = vector.extract %6[0, 0, 0] : f32 from vector<1x1x1xf32>
    %cst_4 = arith.constant 5.000000e-01 : f32
    %8 = arith.mulf %cst_4, %7 : f32
    %c0_5 = arith.constant 0 : index
    %c0_6 = arith.constant 0 : index
    %9 = memref.load %arg3[%c0_5, %c0_6] : memref<1x1xf32, #tpu.memory_space<smem>>
    memref.store %8, %arg3[%c0_5, %c0_6] : memref<1x1xf32, #tpu.memory_space<smem>>
    return
  }
  func.func @transform_0(%arg0: i32) -> (i32, i32) {
    %c0_i32 = arith.constant 0 : i32
    %c0_i32_0 = arith.constant 0 : i32
    %c0_i32_1 = arith.constant 0 : i32
    return %c0_i32, %c0_i32_0 : i32, i32
  }
  func.func @transform_1(%arg0: i32) -> (i32, i32) {
    %c0_i32 = arith.constant 0 : i32
    %c0_i32_0 = arith.constant 0 : i32
    %c0_i32_1 = arith.constant 0 : i32
    return %c0_i32, %c0_i32_0 : i32, i32
  }
  func.func @transform_2(%arg0: i32) -> (i32, i32) {
    %c0_i32 = arith.constant 0 : i32
    %c0_i32_0 = arith.constant 0 : i32
    %c0_i32_1 = arith.constant 0 : i32
    return %c0_i32, %c0_i32_0 : i32, i32
  }
}

</mosaic_0001>

<bundles_post_ra>
// kernel: tpu_custom_call.1
= control target key start
LH: loop header
LB: loop body
LE: loop exit
PB: predicated region body
PF: predicated region fallthrough
CT: control target
= control target key end

     0   :  { %7 = vsyncpa [#allocation3], 0  ;;  %s424_s0 = inlined_call_operand.hbm [shape: f32[1,256], index: 0, kind: input, shape index: {}]   ;;  %s425_s1 = inlined_call_operand.hbm [shape: f32[256,256], index: 1, kind: input, shape index: {}]   ;;  %s426_s2 = inlined_call_operand.hbm [shape: f32[1,1], index: 2, kind: output, shape index: {}]  }
   0x1   :  { %8 = vsyncpa [#allocation6], 0 }
   0x2   :  { %9 = vsyncpa [#allocation4], 0  ;;  %s349_s9 = smov [#allocation2]   ;;  %s350_s11 = smov [#allocation5]  }
   0x3   :  { %s16_s10 = sshll.u32 %s349_s9, 4  ;;  %s25_s12 = sshll.u32 %s350_s11, 4  ;;  %s17_s10 = int_to_ptr.vmem [resolvable:$true] %s16_s10  ;;  %s369_s12 = int_to_ptr.vmem [resolvable:$true] %s25_s12 }
   0x4   :  { %s289_s15 = scalar_lea.hbm %s424_s0, 32 }
   0x5   :  { %p290_p0 = scmp.ne.s32.totalorder %s424_s0, %s289_s15  ;;  %p293_p1 = scmp.lt.u32.totalorder %s289_s15, %s424_s0 }
   0x7   :  { %p295_p2 = pnand %p293_p1, %p290_p0 }
   0x9   :  { %298 = shalt.err (!%p295_p2)
}
   0xa   :  { %s299_s20 = scalar_lea.vmem %s17_s10, 32  ;;  %p304_p4 = scmp.lt.s32.totalorder %s17_s10, %s17_s10 }
   0xb   :  { %p300_p3 = scmp.ne.s32.totalorder %s17_s10, %s299_s20  ;;  %p305_p5 = scmp.lt.s32.totalorder %s299_s20, %s299_s20 }
   0xd   :  { %p306_p6 = por %p305_p5, %p304_p4 }
   0xf   :  { %p307_p7 = pnand %p306_p6, %p300_p3 }
  0x11   :  { %310 = shalt.err (!%p307_p7)
}
  0x12   :  { %19 = dma.hbm_to_vmem [thread:$0]  %s424_s0, 32, %s17_s10, [#allocation3]  }
  0x13   :  { %s311_s25 = scalar_lea.hbm %s425_s1, 8192 }
  0x14   :  { %p312_p8 = scmp.ne.s32.totalorder %s425_s1, %s311_s25  ;;  %p315_p9 = scmp.lt.u32.totalorder %s311_s25, %s425_s1 }
  0x16   :  { %p317_p10 = pnand %p315_p9, %p312_p8 }
  0x18   :  { %320 = shalt.err (!%p317_p10)
}
  0x19   :  { %s321_s30 = scalar_lea.vmem %s369_s12, 8192  ;;  %p326_p12 = scmp.lt.s32.totalorder %s369_s12, %s369_s12 }
  0x1a   :  { %p322_p11 = scmp.ne.s32.totalorder %s369_s12, %s321_s30  ;;  %p327_p13 = scmp.lt.s32.totalorder %s321_s30, %s321_s30 }
  0x1c   :  { %p328_p0 = por %p327_p13, %p326_p12 }
  0x1e   :  { %p329_p1 = pnand %p328_p0, %p322_p11 }
  0x20   :  { %332 = shalt.err (!%p329_p1)
}
  0x21   :  { %s351_s0 = smov 256   ;;  %s352_s3 = smov 16  }
  0x22   :  { %31 = dma.hbm_to_vmem [thread:$0]  %s425_s1, 8192, %s369_s12, [#allocation6], %s351_s0, %s351_s0, %s352_s3  }
  0x23   :  { %343 = dma.done.wait [#allocation3], 32  }
  0x24   :  { %344 = vsyncadd [#allocation3], 4294967264 }
  0x25   :  { %345 = dma.done.wait [#allocation6], 8192  }
  0x26   :  { %346 = vsyncadd [#allocation6], 4294959104  ;;  %v40_v0 = vld [vmem:[#allocation5 + $0x8] sm:$0xff]  ;;  %v42_v1 = vld [vmem:[#allocation5 + $0x18] sm:$0xff]  ;;  %v104_v25 = vlaneseq  ;;  %vm187_vm0 = vcmask 1040384   ;;  %s333_s9 = scalar_lea.hbm %s426_s2, 16 }
  0x27   :  { %v39_v2 = vld [vmem:[#allocation5] sm:$0xff]  ;;  %v218_v3 = vpack.c.bf16 %v42_v1, %v40_v0  ;;  %v41_v4 = vld [vmem:[#allocation5 + $0x10] sm:$0xff]  ;;  %v44_v5 = vld [vmem:[#allocation5 + $0x28] sm:$0xff]  ;;  %p334_p2 = scmp.ne.s32.totalorder %s426_s2, %s333_s9  ;;  %p337_p3 = scmp.lt.u32.totalorder %s333_s9, %s426_s2 }
  0x28   :  { %v46_v6 = vld [vmem:[#allocation5 + $0x38] sm:$0xff]  ;;  %v220_v7 = vpack.c.bf16 %v41_v4, %v39_v2  ;;  %v43_v9 = vld [vmem:[#allocation5 + $0x20] sm:$0xff]  ;;  %v45_v10 = vld [vmem:[#allocation5 + $0x30] sm:$0xff]  ;;  %v400_v32 = vshrl.u32 %v104_v25, 7 }
  0x29   :  { %v222_v8 = vpack.c.bf16 %v46_v6, %v44_v5  ;;  %v48_v11 = vld [vmem:[#allocation5 + $0x48] sm:$0xff]  ;;  %219 = vmatprep.subr.bf16.mxu0 %v218_v3  ;;  %v50_v12 = vld [vmem:[#allocation5 + $0x58] sm:$0xff]  ;;  %v224_v13 = vpack.c.bf16 %v45_v10, %v43_v9  ;;  %v47_v15 = vld [vmem:[#allocation5 + $0x40] sm:$0xff]  ;;  %p339_p4 = pnand %p337_p3, %p334_p2 }
  0x2a   :  { %221 = vmatpush1.bf16.msra.mxu0 %v220_v7  ;;  %v226_v14 = vpack.c.bf16 %v50_v12, %v48_v11  ;;  %v49_v16 = vld [vmem:[#allocation5 + $0x50] sm:$0xff]  ;;  %v52_v17 = vld [vmem:[#allocation5 + $0x68] sm:$0xff]  ;;  %v54_v18 = vld [vmem:[#allocation5 + $0x78] sm:$0xff]  ;;  %v110_v39 = vsub.s32 1, %v400_v32 }
  0x2b   :  { %223 = vmatprep.subr.bf16.mxu0 %v222_v8  ;;  %v228_v19 = vpack.c.bf16 %v49_v16, %v47_v15  ;;  %v230_v20 = vpack.c.bf16 %v54_v18, %v52_v17  ;;  %v51_v21 = vld [vmem:[#allocation5 + $0x60] sm:$0xff]  ;;  %v53_v22 = vld [vmem:[#allocation5 + $0x70] sm:$0xff]  ;;  %v56_v23 = vld [vmem:[#allocation5 + $0x88] sm:$0xff] }
  0x2c   :  { %v58_v24 = vld [vmem:[#allocation5 + $0x98] sm:$0xff]  ;;  %v232_v26 = vpack.c.bf16 %v53_v22, %v51_v21  ;;  %v55_v28 = vld [vmem:[#allocation5 + $0x80] sm:$0xff]  ;;  %v57_v29 = vld [vmem:[#allocation5 + $0x90] sm:$0xff] }
  0x2d   :  { %v234_v27 = vpack.c.bf16 %v58_v24, %v56_v23  ;;  %v60_v30 = vld [vmem:[#allocation5 + $0xa8] sm:$0xff]  ;;  %v62_v31 = vld [vmem:[#allocation5 + $0xb8] sm:$0xff]  ;;  %v236_v33 = vpack.c.bf16 %v57_v29, %v55_v28  ;;  %v59_v35 = vld [vmem:[#allocation5 + $0xa0] sm:$0xff] }
  0x2e   :  { %225 = vmatpush1.bf16.msra.mxu0 %v224_v13  ;;  %v238_v34 = vpack.c.bf16 %v62_v31, %v60_v30  ;;  %v61_v36 = vld [vmem:[#allocation5 + $0xb0] sm:$0xff]  ;;  %v64_v37 = vld [vmem:[#allocation5 + $0xc8] sm:$0xff]  ;;  %v66_v38 = vld [vmem:[#allocation5 + $0xd8] sm:$0xff] }
  0x2f   :  { %227 = vmatprep.subr.bf16.mxu0 %v226_v14  ;;  %v240_v40 = vpack.c.bf16 %v61_v36, %v59_v35  ;;  %v242_v41 = vpack.c.bf16 %v66_v38, %v64_v37  ;;  %v63_v42 = vld [vmem:[#allocation5 + $0xc0] sm:$0xff]  ;;  %v65_v43 = vld [vmem:[#allocation5 + $0xd0] sm:$0xff]  ;;  %v403_v44 = vld [vmem:[#allocation2] sm:$0x3]  ;;  %v106_v37 = vsub.s32 0, %v400_v32 }
  0x30   :  { %v68_v45 = vld [vmem:[#allocation5 + $0xe8] sm:$0xff]  ;;  %v70_v46 = vld [vmem:[#allocation5 + $0xf8] sm:$0xff]  ;;  %v406_v47 = vrot.slane %v403_v44, %v110_v39  ;;  %v244_v48 = vpack.c.bf16 %v65_v43, %v63_v42  ;;  %v67_v50 = vld [vmem:[#allocation5 + $0xe0] sm:$0xff] }
  0x31   :  { %v246_v49 = vpack.c.bf16 %v70_v46, %v68_v45  ;;  %v69_v51 = vld [vmem:[#allocation5 + $0xf0] sm:$0xff]  ;;  %v72_v52 = vld [vmem:[#allocation5 + $0x108] sm:$0xff]  ;;  %v74_v53 = vld [vmem:[#allocation5 + $0x118] sm:$0xff]  ;;  %v107_v39 = vrot.slane %v403_v44, %v106_v37 }
  0x32   :  { %229 = vmatpush1.bf16.msra.mxu0 %v228_v19  ;;  %178 = vmatprep.mubr.f32.mxu0 %v406_v47  ;;  %v248_v54 = vpack.c.bf16 %v69_v51, %v67_v50  ;;  %v250_v55 = vpack.c.bf16 %v74_v53, %v72_v52  ;;  %v71_v56 = vld [vmem:[#allocation5 + $0x100] sm:$0xff]  ;;  %v73_v57 = vld [vmem:[#allocation5 + $0x110] sm:$0xff]  ;;  %v76_v58 = vld [vmem:[#allocation5 + $0x128] sm:$0xff] }
  0x33   :  { %231 = vmatprep.subr.bf16.mxu0 %v230_v20  ;;  %v78_v59 = vld [vmem:[#allocation5 + $0x138] sm:$0xff]  ;;  %v252_v60 = vpack.c.bf16 %v73_v57, %v71_v56  ;;  %v75_v62 = vld [vmem:[#allocation5 + $0x120] sm:$0xff]  ;;  %v77_v63 = vld [vmem:[#allocation5 + $0x130] sm:$0xff] }
  0x34   :  { %v254_v61 = vpack.c.bf16 %v78_v59, %v76_v58  ;;  %v80_v0 = vld [vmem:[#allocation5 + $0x148] sm:$0xff]  ;;  %v82_v1 = vld [vmem:[#allocation5 + $0x158] sm:$0xff]  ;;  %v256_v2 = vpack.c.bf16 %v77_v63, %v75_v62  ;;  %v79_v4 = vld [vmem:[#allocation5 + $0x140] sm:$0xff] }
  0x35   :  { %v258_v3 = vpack.c.bf16 %v82_v1, %v80_v0  ;;  %v81_v5 = vld [vmem:[#allocation5 + $0x150] sm:$0xff]  ;;  %v84_v6 = vld [vmem:[#allocation5 + $0x168] sm:$0xff]  ;;  %v86_v7 = vld [vmem:[#allocation5 + $0x178] sm:$0xff] }
  0x36   :  { %233 = vmatpush1.bf16.msra.mxu0 %v232_v26  ;;  %v260_v8 = vpack.c.bf16 %v81_v5, %v79_v4  ;;  %v262_v9 = vpack.c.bf16 %v86_v7, %v84_v6  ;;  %v83_v10 = vld [vmem:[#allocation5 + $0x160] sm:$0xff]  ;;  %v85_v11 = vld [vmem:[#allocation5 + $0x170] sm:$0xff]  ;;  %v88_v12 = vld [vmem:[#allocation5 + $0x188] sm:$0xff] }
  0x37   :  { %235 = vmatprep.subr.bf16.mxu0 %v234_v27  ;;  %v90_v13 = vld [vmem:[#allocation5 + $0x198] sm:$0xff]  ;;  %v264_v14 = vpack.c.bf16 %v85_v11, %v83_v10  ;;  %v87_v16 = vld [vmem:[#allocation5 + $0x180] sm:$0xff]  ;;  %v89_v17 = vld [vmem:[#allocation5 + $0x190] sm:$0xff] }
  0x38   :  { %v266_v15 = vpack.c.bf16 %v90_v13, %v88_v12  ;;  %v92_v18 = vld [vmem:[#allocation5 + $0x1a8] sm:$0xff]  ;;  %v94_v19 = vld [vmem:[#allocation5 + $0x1b8] sm:$0xff]  ;;  %v268_v20 = vpack.c.bf16 %v89_v17, %v87_v16  ;;  %v91_v22 = vld [vmem:[#allocation5 + $0x1a0] sm:$0xff] }
  0x39   :  { %v270_v21 = vpack.c.bf16 %v94_v19, %v92_v18  ;;  %v93_v23 = vld [vmem:[#allocation5 + $0x1b0] sm:$0xff]  ;;  %v96_v24 = vld [vmem:[#allocation5 + $0x1c8] sm:$0xff]  ;;  %v98_v25 = vld [vmem:[#allocation5 + $0x1d8] sm:$0xff] }
  0x3a   :  { %237 = vmatpush1.bf16.msra.mxu0 %v236_v33  ;;  %v272_v26 = vpack.c.bf16 %v93_v23, %v91_v22  ;;  %v274_v27 = vpack.c.bf16 %v98_v25, %v96_v24  ;;  %v95_v28 = vld [vmem:[#allocation5 + $0x1c0] sm:$0xff]  ;;  %v97_v29 = vld [vmem:[#allocation5 + $0x1d0] sm:$0xff]  ;;  %v100_v30 = vld [vmem:[#allocation5 + $0x1e8] sm:$0xff] }
  0x3b   :  { %239 = vmatprep.subr.bf16.mxu0 %v238_v34  ;;  %v102_v31 = vld [vmem:[#allocation5 + $0x1f8] sm:$0xff]  ;;  %v276_v33 = vpack.c.bf16 %v97_v29, %v95_v28  ;;  %v99_v35 = vld [vmem:[#allocation5 + $0x1e0] sm:$0xff]  ;;  %v101_v36 = vld [vmem:[#allocation5 + $0x1f0] sm:$0xff] }
  0x3c   :  { %v278_v34 = vpack.c.bf16 %v102_v31, %v100_v30  ;;  %v280_v38 = vpack.c.bf16 %v101_v36, %v99_v35 }
  0x3e   :  { %241 = vmatpush1.bf16.msra.mxu0 %v240_v40 }
  0x3f   :  { %243 = vmatprep.subr.bf16.mxu0 %v242_v41 }
  0x42   :  { %245 = vmatpush1.bf16.msra.mxu0 %v244_v48 }
  0x43   :  { %247 = vmatprep.subr.bf16.mxu0 %v246_v49 }
  0x46   :  { %249 = vmatpush1.bf16.msra.mxu0 %v248_v54 }
  0x47   :  { %251 = vmatprep.subr.bf16.mxu0 %v250_v55 }
  0x4a   :  { %253 = vmatpush1.bf16.msra.mxu0 %v252_v60 }
  0x4b   :  { %255 = vmatprep.subr.bf16.mxu0 %v254_v61 }
  0x4e   :  { %257 = vmatpush1.bf16.msra.mxu0 %v256_v2 }
  0x4f   :  { %259 = vmatprep.subr.bf16.mxu0 %v258_v3 }
  0x52   :  { %261 = vmatpush1.bf16.msra.mxu0 %v260_v8 }
  0x53   :  { %263 = vmatprep.subr.bf16.mxu0 %v262_v9 }
  0x56   :  { %265 = vmatpush1.bf16.msra.mxu0 %v264_v14 }
  0x57   :  { %267 = vmatprep.subr.bf16.mxu0 %v266_v15 }
  0x5a   :  { %269 = vmatpush1.bf16.msra.mxu0 %v268_v20 }
  0x5b   :  { %271 = vmatprep.subr.bf16.mxu0 %v270_v21 }
  0x5e   :  { %273 = vmatpush1.bf16.msra.mxu0 %v272_v26 }
  0x5f   :  { %275 = vmatprep.subr.bf16.mxu0 %v274_v27 }
  0x62   :  { %277 = vmatpush1.bf16.msra.mxu0 %v276_v33 }
  0x63   :  { %279 = vmatprep.subr.bf16.mxu0 %v278_v34 }
  0x66   :  { %281 = vmatpush1.bf16.msra.mxu0 %v280_v38 }
  0x69   :  { %179 = vmatmul.mubr.f32.vlgmr.msra.gmra.mrb[0].mxu0 %v107_v39 }
 0x13c   :  { %v180_v40 = vpop.f32.mrb[0].mxu0 }
 0x13d   :  { %v185_v41 = vmul.f32 %v180_v40, %v107_v39  ;;  %v182_v42 = vpop.f32.mrb[1].mxu0 }
 0x13e   :  { %v186_v43 = vmul.f32 %v182_v42, %v406_v47 }
 0x13f   :  { %v188_v45 = vsel %vm187_vm0, %v185_v41, 0.0 }
 0x140   :  { %v189_v46 = vsel %vm187_vm0, %v186_v43, 0.0 }
 0x141   :  { %v190_v48 = vadd.f32 %v189_v46, %v188_v45 }
 0x143   :  { %191 = vadd.xlane.f32.xlu0 %v190_v48 }
 0x1d0   :  { %v192_v49 = vpop.xlane.xlu0 %191 }
 0x1d1   :  { %v193_v50 = vrot.slane %v192_v49, 4 }
 0x1d3   :  { %v194_v32 = vadd.f32 %v193_v50, %v192_v49 }
 0x1d5   :  { %v195_v51 = vrot.slane %v194_v32, 2 }
 0x1d7   :  { %v196_v52 = vadd.f32 %v195_v51, %v194_v32 }
 0x1d9   :  { %v197_v53 = vrot.slane %v196_v52, 1 }
 0x1db   :  { %v198_v54 = vadd.f32 %v197_v53, %v196_v52 }
 0x1dd   :  { %282 = vpush %v198_v54 }
 0x20e   :  { %s283_s1 = spop %282 }
 0x20f   :  { %s200_s6 = smul.f32 0.5, %s283_s1 }
 0x211   :  { %202 = sst [smem:[#allocation7]] %s200_s6 }
 0x212   :  { %342 = shalt.err (!%p339_p4)
}
 0x213   :  { %s353_s14 = smov [#allocation7]  }
 0x214   :  { %210 = dma.smem_to_hbm %s353_s14, 16, %s426_s2, [#allocation4]  }
 0x215   :  { %347 = dma.done.wait [#allocation4], 16  }
 0x216   :  { %348 = vsyncadd [#allocation4], 4294967280 }
 0x217   :  { %214 = sfence }
 0x218   :  { %215 = vsyncpa [#allocation3], 1 }
 0x219   :  { %216 = vsyncpa [#allocation6], 1 }
 0x21a   :  { %217 = vsyncpa [#allocation4], 1 }

</bundles_post_ra>
